<compile_context>
chip_gen: v5e
topology: v5e:2x2
jax: 0.10.0
libtpu: 0.0.40
codegen_flags: <defaults>
</compile_context>

<pallas_src>
from functools import partial

import jax
import jax.numpy as jnp
from jax.experimental import pallas as pl
from jax.experimental.pallas import tpu as pltpu


# ----------------------------------------------------------------------------
# Generic pointwise channel-affine Pallas kernel:
#   y[n, o, p] = sum_i W[o, i] * x[n, i, p] + b[o]   (+ residual) (, ReLU)
# ----------------------------------------------------------------------------

def _affine_kernel(x_ref, w_ref, b_ref, *rest, bt_group, c_in, c_out, has_res,
                   apply_relu):
    # x_ref:   (1, Bt*Cin,  HWt)  -- batch-group packed along sublanes
    # w_ref:   (Cout, Cin)        -- resident across the whole grid
    # b_ref:   (Cout, 1)
    # res_ref: (1, Bt*Cout, HWt)  (optional)
    # o_ref:   (1, Bt*Cout, HWt)
    if has_res:
        res_ref, o_ref = rest
    else:
        (o_ref,) = rest

    w = w_ref[...]                      # (Cout, Cin)
    b = b_ref[...]                      # (Cout, 1)

    for bb in range(bt_group):          # static unroll; Bt is small
        xs = x_ref[0, bb * c_in:(bb + 1) * c_in, :]      # (Cin, HWt)
        if c_in <= 8:
            # Tiny contraction: pure VPU broadcast-FMAs (kernel is HBM-bound,
            # VALU has plenty of slack) -- avoids a degenerate small matmul.
            y = b + w[:, 0:1] * xs[0:1, :]
            for i in range(1, c_in):
                y = y + w[:, i:i + 1] * xs[i:i + 1, :]
        else:
            y = jnp.dot(w, xs, preferred_element_type=jnp.float32) + b
        if has_res:
            y = y + res_ref[0, bb * c_out:(bb + 1) * c_out, :]
        if apply_relu:
            y = jnp.maximum(y, 0.0)
        o_ref[0, bb * c_out:(bb + 1) * c_out, :] = y.astype(o_ref.dtype)


def _round_up(x, m):
    return ((x + m - 1) // m) * m


def _pick_batch_group(n, c_out):
    """Smallest batch group Bt (dividing n) with Bt*c_out >= 8 sublanes."""
    if c_out >= 8:
        return 1
    for d in range(1, n + 1):
        if n % d == 0 and d * c_out >= 8:
            return d
    # Whole batch still < 8 sublanes (e.g. projection c_out=1, tiny N):
    # accept a sublane-masked store on that (small) output slab.
    return n


_VMEM_CAP_CACHE = [None]


def _vmem_capacity_bytes():
    """Physical VMEM per TensorCore (128 MiB v5e/v6e, 64 MiB v7x)."""
    if _VMEM_CAP_CACHE[0] is None:
        cap = 64 * 1024 * 1024   # conservative fallback (v7x per-TC)
        try:
            info = pltpu.get_tpu_info()
            cap = int(getattr(info, "vmem_capacity_bytes", cap)) or cap
        except Exception:
            pass
        _VMEM_CAP_CACHE[0] = cap
    return _VMEM_CAP_CACHE[0]


def _divisor_tiles(hw):
    """Ascending candidate HW tiles that divide hw exactly."""
    if hw % 128 != 0:
        return [hw]                       # single full-extent block (no padding)
    return [d for d in range(128, hw + 1, 128) if hw % d == 0]


def _pick_hw_tile(hw, bt, c_in, c_out, has_res, g, budget):
    # Per lane-column f32 bytes across all double-buffered blocks, accounting
    # for (8, 128) sublane round-up of each slab.
    sub_in = _round_up(bt * c_in, 8)
    sub_out = _round_up(bt * c_out, 8)
    per_col = 4 * (sub_in + sub_out * (2 if has_res else 1)) * 2
    cap = max(256, min(budget // max(per_col, 1), 4096))
    cands = _divisor_tiles(hw)
    fits = [c for c in cands if c <= cap] or [cands[0]]
    tile = fits[-1]
    # Megacore: prefer >= 2 grid steps so a second TensorCore has work.
    if g * (hw // tile) < 2:
        smaller = [c for c in fits if hw // c >= 2]
        if smaller:
            tile = smaller[-1]
    return tile


def channel_affine(x, w, b, residual=None, relu=False):
    """NCHW pointwise channel affine via Pallas. x: (N, Cin, H, W) f32."""
    n, c_in, h, wd = x.shape
    c_out = w.shape[0]
    assert w.shape == (c_out, c_in)
    hw = h * wd

    bt = _pick_batch_group(n, c_out)
    g = n // bt

    vmem_cap = _vmem_capacity_bytes()
    block_budget = min(int(vmem_cap * 0.4), 48 * 1024 * 1024)
    vmem_limit = min(int(vmem_cap * 0.75), 96 * 1024 * 1024)

    hw_tile = _pick_hw_tile(hw, bt, c_in, c_out, residual is not None, g,
                            block_budget)
    t = hw // hw_tile                     # exact: hw_tile divides hw

    # Pure reshapes (contiguous), no padding / extra HBM copies.
    x_grp = x.reshape(g, bt * c_in, hw)
    w2 = w.reshape(c_out, c_in).astype(x.dtype)   # (Cout, Cin): resident
    b2 = b.reshape(c_out, 1).astype(x.dtype)

    operands = [x_grp, w2, b2]
    in_specs = [
        pl.BlockSpec((1, bt * c_in, hw_tile), lambda gi, ti: (gi, 0, ti)),
        pl.BlockSpec((c_out, c_in), lambda gi, ti: (0, 0)),
        pl.BlockSpec((c_out, 1), lambda gi, ti: (0, 0)),
    ]
    if residual is not None:
        operands.append(residual.reshape(g, bt * c_out, hw))
        in_specs.append(
            pl.BlockSpec((1, bt * c_out, hw_tile), lambda gi, ti: (gi, 0, ti)))

    kernel = partial(_affine_kernel, bt_group=bt, c_in=c_in, c_out=c_out,
                     has_res=residual is not None, apply_relu=relu)

    flops = 2 * n * c_out * c_in * hw
    bytes_accessed = 4 * (n * c_in * hw
                          + n * c_out * hw * (2 if residual is not None else 1)
                          + c_out * c_in + c_out)

    out = pl.pallas_call(
        kernel,
        out_shape=jax.ShapeDtypeStruct((g, bt * c_out, hw), x.dtype),
        grid_spec=pltpu.PrefetchScalarGridSpec(
            num_scalar_prefetch=0,
            grid=(g, t),
            in_specs=in_specs,
            out_specs=pl.BlockSpec((1, bt * c_out, hw_tile),
                                   lambda gi, ti: (gi, 0, ti)),
        ),
        compiler_params=pltpu.CompilerParams(
            dimension_semantics=("parallel", "parallel"),
            vmem_limit_bytes=vmem_limit,
        ),
        cost_estimate=pl.CostEstimate(flops=flops, transcendentals=0,
                                      bytes_accessed=bytes_accessed),
    )(*operands)

    return out.reshape(n, c_out, h, wd)


# ----------------------------------------------------------------------------
# SpectralConv2d (FFT + complex mode mixing) -- plain JAX, no Pallas FFT.
# ----------------------------------------------------------------------------

def spectral_conv2d(x, w1, w2, modes1, modes2):
    # x: (N, Cin, H, W) f32; w1/w2: (Cin, Cout, m1, m2) complex64
    n, c_in, h, wd = x.shape
    c_out = w1.shape[1]
    wr = wd // 2 + 1
    x_hat = jnp.fft.rfft2(x)                                   # (N, Cin, H, wr)

    # Merged contraction over the two retained mode blocks (one einsum).
    x_modes = jnp.stack([x_hat[:, :, :modes1, :modes2],
                         x_hat[:, :, h - modes1:, :modes2]], axis=0)   # (2,N,Cin,m1,m2)
    ws = jnp.stack([w1, w2], axis=0)                                    # (2,Cin,Cout,m1,m2)
    mixed = jnp.einsum("sbikl,siokl->sbokl", x_modes, ws)               # (2,N,Cout,m1,m2)

    if h >= 2 * modes1:
        # Single-pass assembly: [top | zeros | bottom] along H, zero-pad freq.
        mid = jnp.zeros((n, c_out, h - 2 * modes1, modes2), dtype=mixed.dtype)
        stacked = jnp.concatenate([mixed[0], mid, mixed[1]], axis=2)    # (N,Cout,H,m2)
        out_hat = jnp.pad(stacked,
                          ((0, 0), (0, 0), (0, 0), (0, wr - modes2)))
    else:
        # Overlapping mode blocks (rare): keep torch overwrite semantics.
        out_hat = jnp.zeros((n, c_out, h, wr), dtype=mixed.dtype)
        out_hat = out_hat.at[:, :, :modes1, :modes2].set(mixed[0])
        out_hat = out_hat.at[:, :, h - modes1:, :modes2].set(mixed[1])
    return jnp.fft.irfft2(out_hat, s=(h, wd))


# ----------------------------------------------------------------------------
# Full FNO forward (Pallas-backed) and a pure-JAX reference.
# ----------------------------------------------------------------------------

def fno_forward(x, params, modes1, modes2):
    y = channel_affine(x, params["lift_w"], params["lift_b"])          # Lifting
    for blk in params["blocks"]:
        y1 = spectral_conv2d(y, blk["w1"], blk["w2"], modes1, modes2)  # FFT branch
        y = channel_affine(y, blk["lin_w"], blk["lin_b"],
                           residual=y1, relu=True)                     # fused Linear+add+ReLU
    y = channel_affine(y, params["proj_w"], params["proj_b"])          # Projection
    return y


def _affine_reference(x, w, b, residual=None, relu=False):
    y = jnp.einsum("nihw,oi->nohw", x, w,
                   precision=jax.lax.Precision.HIGHEST)
    y = y + b.reshape(1, -1, 1, 1)
    if residual is not None:
        y = y + residual
    if relu:
        y = jnp.maximum(y, 0.0)
    return y


def _spectral_reference(x, w1, w2, modes1, modes2):
    # Original zeros + scatter construction (independently checks the
    # merged-einsum / concatenate assembly used in spectral_conv2d).
    n, c_in, h, wd = x.shape
    c_out = w1.shape[1]
    x_hat = jnp.fft.rfft2(x)
    out_hat = jnp.zeros((n, c_out, h, wd // 2 + 1), dtype=x_hat.dtype)
    top = jnp.einsum("bikl,iokl->bokl", x_hat[:, :, :modes1, :modes2], w1)
    bot = jnp.einsum("bikl,iokl->bokl", x_hat[:, :, h - modes1:, :modes2], w2)
    out_hat = out_hat.at[:, :, :modes1, :modes2].set(top)
    out_hat = out_hat.at[:, :, h - modes1:, :modes2].set(bot)
    return jnp.fft.irfft2(out_hat, s=(h, wd))


def fno_reference(x, params, modes1, modes2):
    y = _affine_reference(x, params["lift_w"], params["lift_b"])
    for blk in params["blocks"]:
        y1 = _spectral_reference(y, blk["w1"], blk["w2"], modes1, modes2)
        y = _affine_reference(y, blk["lin_w"], blk["lin_b"],
                              residual=y1, relu=True)
    y = _affine_reference(y, params["proj_w"], params["proj_b"])
    return y


# ----------------------------------------------------------------------------

if __name__ == "__main__":
    N, H, W = 2, 16, 16
    width = 4                    # FNO width (lifted channel count)
    modes1 = modes2 = 4

    key = jax.random.PRNGKey(0)
    ks = jax.random.split(key, 32)

    def cweight(k1, k2, shape, scale):
        re = jax.random.uniform(k1, shape, dtype=jnp.float32)
        im = jax.random.uniform(k2, shape, dtype=jnp.float32)
        return (scale * (re + 1j * im)).astype(jnp.complex64)

    scale = 1.0 / (width * width)
    params = {
        "lift_w": jax.random.normal(ks[0], (width, 1), jnp.float32) * 0.5,
        "lift_b": jax.random.normal(ks[1], (width,), jnp.float32) * 0.1,
        "proj_w": jax.random.normal(ks[2], (1, width), jnp.float32) * 0.5,
        "proj_b": jax.random.normal(ks[3], (1,), jnp.float32) * 0.1,
        "blocks": [],
    }
    ki = 4
    for _ in range(4):
        params["blocks"].append({
            "w1": cweight(ks[ki], ks[ki + 1], (width, width, modes1, modes2), scale),
            "w2": cweight(ks[ki + 2], ks[ki + 3], (width, width, modes1, modes2), scale),
            "lin_w": jax.random.normal(ks[ki + 4], (width, width), jnp.float32) * 0.5,
            "lin_b": jax.random.normal(ks[ki + 5], (width,), jnp.float32) * 0.1,
        })
        ki += 6

    x = jax.random.normal(ks[ki], (N, 1, H, W), dtype=jnp.float32)

    # Pallas-backed forward pass.
    fno_fn = jax.jit(lambda xx, pp: fno_forward(xx, pp, modes1, modes2))
    y = jax.block_until_ready(fno_fn(x, params))

    # Pure-JAX reference (einsum affines + scatter-built spectral branch).
    y_ref = jax.block_until_ready(fno_reference(x, params, modes1, modes2))

    assert y.shape == (N, 1, H, W)
    assert jnp.allclose(y, y_ref, atol=1e-4, rtol=1e-4), \
        float(jnp.max(jnp.abs(y - y_ref)))

    # Spot-check the standalone lifting kernel as well.
    y_lift = channel_affine(x, params["lift_w"], params["lift_b"])
    y_lift_ref = _affine_reference(x, params["lift_w"], params["lift_b"])
    assert jnp.allclose(y_lift, y_lift_ref, atol=1e-5, rtol=1e-5)

    print("KERNEL_OK")
</pallas_src>

<mosaic_0001>
module attributes {stable_mosaic.version = 11 : i64} {
  func.func @_affine_kernel(%arg0: i32, %arg1: i32, %arg2: memref<1x2x128xf32, #tpu.memory_space<vmem>>, %arg3: memref<4x1xf32, #tpu.memory_space<vmem>>, %arg4: memref<4x1xf32, #tpu.memory_space<vmem>>, %arg5: memref<1x8x128xf32, #tpu.memory_space<vmem>>) attributes {dimension_semantics = [#tpu.dimension_semantics<parallel>, #tpu.dimension_semantics<parallel>], iteration_bounds = array<i64: 1, 2>, scalar_prefetch = 0 : i64, scratch_operands = 0 : i64, tpu.core_type = #tpu.core_type<tc>, window_params = [{transform_indices = @transform_0, window_bounds = array<i64: 1, 2, 128>}, {pipeline_mode = #tpu.pipeline_mode<synchronous>, transform_indices = @transform_1, window_bounds = array<i64: 4, 1>}, {pipeline_mode = #tpu.pipeline_mode<synchronous>, transform_indices = @transform_2, window_bounds = array<i64: 4, 1>}, {transform_indices = @transform_3, window_bounds = array<i64: 1, 8, 128>}]} {
    %c0 = arith.constant 0 : index
    %c0_0 = arith.constant 0 : index
    %0 = vector.load %arg3[%c0, %c0_0] : memref<4x1xf32, #tpu.memory_space<vmem>>, vector<4x1xf32>
    %c0_1 = arith.constant 0 : index
    %c0_2 = arith.constant 0 : index
    %1 = vector.load %arg4[%c0_1, %c0_2] : memref<4x1xf32, #tpu.memory_space<vmem>>, vector<4x1xf32>
    %c0_3 = arith.constant 0 : index
    %c0_4 = arith.constant 0 : index
    %c0_5 = arith.constant 0 : index
    %2 = vector.load %arg2[%c0_3, %c0_4, %c0_5] : memref<1x2x128xf32, #tpu.memory_space<vmem>>, vector<1x1x128xf32>
    %3 = vector.shape_cast %2 : vector<1x1x128xf32> to vector<1x128xf32>
    %4 = vector.broadcast %0 : vector<4x1xf32> to vector<4x128xf32>
    %5 = vector.broadcast %3 : vector<1x128xf32> to vector<4x128xf32>
    %6 = arith.mulf %4, %5 : vector<4x128xf32>
    %7 = vector.broadcast %1 : vector<4x1xf32> to vector<4x128xf32>
    %8 = arith.addf %7, %6 : vector<4x128xf32>
    %c0_6 = arith.constant 0 : index
    %c0_7 = arith.constant 0 : index
    %c0_8 = arith.constant 0 : index
    %9 = vector.load %arg5[%c0_6, %c0_7, %c0_8] : memref<1x8x128xf32, #tpu.memory_space<vmem>>, vector<1x4x128xf32>
    %10 = vector.shape_cast %9 : vector<1x4x128xf32> to vector<4x128xf32>
    %11 = vector.shape_cast %8 : vector<4x128xf32> to vector<1x4x128xf32>
    tpu.vector_store %arg5[%c0_6, %c0_7, %c0_8], %11 {strides = array<i32>} : memref<1x8x128xf32, #tpu.memory_space<vmem>>, vector<1x4x128xf32>,
    %c0_9 = arith.constant 0 : index
    %c1 = arith.constant 1 : index
    %c0_10 = arith.constant 0 : index
    %12 = vector.load %arg2[%c0_9, %c1, %c0_10] : memref<1x2x128xf32, #tpu.memory_space<vmem>>, vector<1x1x128xf32>
    %13 = vector.shape_cast %12 : vector<1x1x128xf32> to vector<1x128xf32>
    %14 = vector.broadcast %0 : vector<4x1xf32> to vector<4x128xf32>
    %15 = vector.broadcast %13 : vector<1x128xf32> to vector<4x128xf32>
    %16 = arith.mulf %14, %15 : vector<4x128xf32>
    %17 = vector.broadcast %1 : vector<4x1xf32> to vector<4x128xf32>
    %18 = arith.addf %17, %16 : vector<4x128xf32>
    %c0_11 = arith.constant 0 : index
    %c4 = arith.constant 4 : index
    %c0_12 = arith.constant 0 : index
    %19 = vector.load %arg5[%c0_11, %c4, %c0_12] : memref<1x8x128xf32, #tpu.memory_space<vmem>>, vector<1x4x128xf32>
    %20 = vector.shape_cast %19 : vector<1x4x128xf32> to vector<4x128xf32>
    %21 = vector.shape_cast %18 : vector<4x128xf32> to vector<1x4x128xf32>
    tpu.vector_store %arg5[%c0_11, %c4, %c0_12], %21 {strides = array<i32>} : memref<1x8x128xf32, #tpu.memory_space<vmem>>, vector<1x4x128xf32>,
    return
  }
  func.func @transform_0(%arg0: i32, %arg1: i32) -> (i32, i32, i32) {
    %c0_i32 = arith.constant 0 : i32
    %c0_i32_0 = arith.constant 0 : i32
    return %arg0, %c0_i32, %arg1 : i32, i32, i32
  }
  func.func @transform_1(%arg0: i32, %arg1: i32) -> (i32, i32) {
    %c0_i32 = arith.constant 0 : i32
    %c0_i32_0 = arith.constant 0 : i32
    %c0_i32_1 = arith.constant 0 : i32
    return %c0_i32, %c0_i32_0 : i32, i32
  }
  func.func @transform_2(%arg0: i32, %arg1: i32) -> (i32, i32) {
    %c0_i32 = arith.constant 0 : i32
    %c0_i32_0 = arith.constant 0 : i32
    %c0_i32_1 = arith.constant 0 : i32
    return %c0_i32, %c0_i32_0 : i32, i32
  }
  func.func @transform_3(%arg0: i32, %arg1: i32) -> (i32, i32, i32) {
    %c0_i32 = arith.constant 0 : i32
    %c0_i32_0 = arith.constant 0 : i32
    return %arg0, %c0_i32, %arg1 : i32, i32, i32
  }
}

module attributes {stable_mosaic.version = 11 : i64} {
  func.func @_affine_kernel(%arg0: i32, %arg1: i32, %arg2: memref<1x8x128xf32, #tpu.memory_space<vmem>>, %arg3: memref<4x4xf32, #tpu.memory_space<vmem>>, %arg4: memref<4x1xf32, #tpu.memory_space<vmem>>, %arg5: memref<1x8x128xf32, #tpu.memory_space<vmem>>, %arg6: memref<1x8x128xf32, #tpu.memory_space<vmem>>) attributes {dimension_semantics = [#tpu.dimension_semantics<parallel>, #tpu.dimension_semantics<parallel>], iteration_bounds = array<i64: 1, 2>, scalar_prefetch = 0 : i64, scratch_operands = 0 : i64, tpu.core_type = #tpu.core_type<tc>, window_params = [{transform_indices = @transform_0, window_bounds = array<i64: 1, 8, 128>}, {pipeline_mode = #tpu.pipeline_mode<synchronous>, transform_indices = @transform_1, window_bounds = array<i64: 4, 4>}, {pipeline_mode = #tpu.pipeline_mode<synchronous>, transform_indices = @transform_2, window_bounds = array<i64: 4, 1>}, {transform_indices = @transform_3, window_bounds = array<i64: 1, 8, 128>}, {transform_indices = @transform_4, window_bounds = array<i64: 1, 8, 128>}]} {
    %c0 = arith.constant 0 : index
    %c0_0 = arith.constant 0 : index
    %0 = vector.load %arg3[%c0, %c0_0] : memref<4x4xf32, #tpu.memory_space<vmem>>, vector<4x4xf32>
    %c0_1 = arith.constant 0 : index
    %c0_2 = arith.constant 0 : index
    %1 = vector.load %arg4[%c0_1, %c0_2] : memref<4x1xf32, #tpu.memory_space<vmem>>, vector<4x1xf32>
    %c0_3 = arith.constant 0 : index
    %c0_4 = arith.constant 0 : index
    %c0_5 = arith.constant 0 : index
    %2 = vector.load %arg2[%c0_3, %c0_4, %c0_5] : memref<1x8x128xf32, #tpu.memory_space<vmem>>, vector<1x4x128xf32>
    %3 = vector.shape_cast %2 : vector<1x4x128xf32> to vector<4x128xf32>
    %4 = vector.extract_strided_slice %0 {offsets = [0, 0], sizes = [4, 1], strides = [1, 1]} : vector<4x4xf32> to vector<4x1xf32>
    %5 = vector.extract_strided_slice %3 {offsets = [0, 0], sizes = [1, 128], strides = [1, 1]} : vector<4x128xf32> to vector<1x128xf32>
    %6 = vector.broadcast %4 : vector<4x1xf32> to vector<4x128xf32>
    %7 = vector.broadcast %5 : vector<1x128xf32> to vector<4x128xf32>
    %8 = arith.mulf %6, %7 : vector<4x128xf32>
    %9 = vector.broadcast %1 : vector<4x1xf32> to vector<4x128xf32>
    %10 = arith.addf %9, %8 : vector<4x128xf32>
    %11 = vector.extract_strided_slice %0 {offsets = [0, 1], sizes = [4, 1], strides = [1, 1]} : vector<4x4xf32> to vector<4x1xf32>
    %12 = vector.extract_strided_slice %3 {offsets = [1, 0], sizes = [1, 128], strides = [1, 1]} : vector<4x128xf32> to vector<1x128xf32>
    %13 = vector.broadcast %11 : vector<4x1xf32> to vector<4x128xf32>
    %14 = vector.broadcast %12 : vector<1x128xf32> to vector<4x128xf32>
    %15 = arith.mulf %13, %14 : vector<4x128xf32>
    %16 = arith.addf %10, %15 : vector<4x128xf32>
    %17 = vector.extract_strided_slice %0 {offsets = [0, 2], sizes = [4, 1], strides = [1, 1]} : vector<4x4xf32> to vector<4x1xf32>
    %18 = vector.extract_strided_slice %3 {offsets = [2, 0], sizes = [1, 128], strides = [1, 1]} : vector<4x128xf32> to vector<1x128xf32>
    %19 = vector.broadcast %17 : vector<4x1xf32> to vector<4x128xf32>
    %20 = vector.broadcast %18 : vector<1x128xf32> to vector<4x128xf32>
    %21 = arith.mulf %19, %20 : vector<4x128xf32>
    %22 = arith.addf %16, %21 : vector<4x128xf32>
    %23 = vector.extract_strided_slice %0 {offsets = [0, 3], sizes = [4, 1], strides = [1, 1]} : vector<4x4xf32> to vector<4x1xf32>
    %24 = vector.extract_strided_slice %3 {offsets = [3, 0], sizes = [1, 128], strides = [1, 1]} : vector<4x128xf32> to vector<1x128xf32>
    %25 = vector.broadcast %23 : vector<4x1xf32> to vector<4x128xf32>
    %26 = vector.broadcast %24 : vector<1x128xf32> to vector<4x128xf32>
    %27 = arith.mulf %25, %26 : vector<4x128xf32>
    %28 = arith.addf %22, %27 : vector<4x128xf32>
    %c0_6 = arith.constant 0 : index
    %c0_7 = arith.constant 0 : index
    %c0_8 = arith.constant 0 : index
    %29 = vector.load %arg5[%c0_6, %c0_7, %c0_8] : memref<1x8x128xf32, #tpu.memory_space<vmem>>, vector<1x4x128xf32>
    %30 = vector.shape_cast %29 : vector<1x4x128xf32> to vector<4x128xf32>
    %31 = arith.addf %28, %30 : vector<4x128xf32>
    %cst = arith.constant 0.000000e+00 : f32
    %32 = vector.broadcast %cst : f32 to vector<4x128xf32>
    %33 = arith.maximumf %31, %32 : vector<4x128xf32>
    %c0_9 = arith.constant 0 : index
    %c0_10 = arith.constant 0 : index
    %c0_11 = arith.constant 0 : index
    %34 = vector.load %arg6[%c0_9, %c0_10, %c0_11] : memref<1x8x128xf32, #tpu.memory_space<vmem>>, vector<1x4x128xf32>
    %35 = vector.shape_cast %34 : vector<1x4x128xf32> to vector<4x128xf32>
    %36 = vector.shape_cast %33 : vector<4x128xf32> to vector<1x4x128xf32>
    tpu.vector_store %arg6[%c0_9, %c0_10, %c0_11], %36 {strides = array<i32>} : memref<1x8x128xf32, #tpu.memory_space<vmem>>, vector<1x4x128xf32>,
    %c0_12 = arith.constant 0 : index
    %c4 = arith.constant 4 : index
    %c0_13 = arith.constant 0 : index
    %37 = vector.load %arg2[%c0_12, %c4, %c0_13] : memref<1x8x128xf32, #tpu.memory_space<vmem>>, vector<1x4x128xf32>
    %38 = vector.shape_cast %37 : vector<1x4x128xf32> to vector<4x128xf32>
    %39 = vector.extract_strided_slice %0 {offsets = [0, 0], sizes = [4, 1], strides = [1, 1]} : vector<4x4xf32> to vector<4x1xf32>
    %40 = vector.extract_strided_slice %38 {offsets = [0, 0], sizes = [1, 128], strides = [1, 1]} : vector<4x128xf32> to vector<1x128xf32>
    %41 = vector.broadcast %39 : vector<4x1xf32> to vector<4x128xf32>
    %42 = vector.broadcast %40 : vector<1x128xf32> to vector<4x128xf32>
    %43 = arith.mulf %41, %42 : vector<4x128xf32>
    %44 = vector.broadcast %1 : vector<4x1xf32> to vector<4x128xf32>
    %45 = arith.addf %44, %43 : vector<4x128xf32>
    %46 = vector.extract_strided_slice %0 {offsets = [0, 1], sizes = [4, 1], strides = [1, 1]} : vector<4x4xf32> to vector<4x1xf32>
    %47 = vector.extract_strided_slice %38 {offsets = [1, 0], sizes = [1, 128], strides = [1, 1]} : vector<4x128xf32> to vector<1x128xf32>
    %48 = vector.broadcast %46 : vector<4x1xf32> to vector<4x128xf32>
    %49 = vector.broadcast %47 : vector<1x128xf32> to vector<4x128xf32>
    %50 = arith.mulf %48, %49 : vector<4x128xf32>
    %51 = arith.addf %45, %50 : vector<4x128xf32>
    %52 = vector.extract_strided_slice %0 {offsets = [0, 2], sizes = [4, 1], strides = [1, 1]} : vector<4x4xf32> to vector<4x1xf32>
    %53 = vector.extract_strided_slice %38 {offsets = [2, 0], sizes = [1, 128], strides = [1, 1]} : vector<4x128xf32> to vector<1x128xf32>
    %54 = vector.broadcast %52 : vector<4x1xf32> to vector<4x128xf32>
    %55 = vector.broadcast %53 : vector<1x128xf32> to vector<4x128xf32>
    %56 = arith.mulf %54, %55 : vector<4x128xf32>
    %57 = arith.addf %51, %56 : vector<4x128xf32>
    %58 = vector.extract_strided_slice %0 {offsets = [0, 3], sizes = [4, 1], strides = [1, 1]} : vector<4x4xf32> to vector<4x1xf32>
    %59 = vector.extract_strided_slice %38 {offsets = [3, 0], sizes = [1, 128], strides = [1, 1]} : vector<4x128xf32> to vector<1x128xf32>
    %60 = vector.broadcast %58 : vector<4x1xf32> to vector<4x128xf32>
    %61 = vector.broadcast %59 : vector<1x128xf32> to vector<4x128xf32>
    %62 = arith.mulf %60, %61 : vector<4x128xf32>
    %63 = arith.addf %57, %62 : vector<4x128xf32>
    %c0_14 = arith.constant 0 : index
    %c4_15 = arith.constant 4 : index
    %c0_16 = arith.constant 0 : index
    %64 = vector.load %arg5[%c0_14, %c4_15, %c0_16] : memref<1x8x128xf32, #tpu.memory_space<vmem>>, vector<1x4x128xf32>
    %65 = vector.shape_cast %64 : vector<1x4x128xf32> to vector<4x128xf32>
    %66 = arith.addf %63, %65 : vector<4x128xf32>
    %cst_17 = arith.constant 0.000000e+00 : f32
    %67 = vector.broadcast %cst_17 : f32 to vector<4x128xf32>
    %68 = arith.maximumf %66, %67 : vector<4x128xf32>
    %c0_18 = arith.constant 0 : index
    %c4_19 = arith.constant 4 : index
    %c0_20 = arith.constant 0 : index
    %69 = vector.load %arg6[%c0_18, %c4_19, %c0_20] : memref<1x8x128xf32, #tpu.memory_space<vmem>>, vector<1x4x128xf32>
    %70 = vector.shape_cast %69 : vector<1x4x128xf32> to vector<4x128xf32>
    %71 = vector.shape_cast %68 : vector<4x128xf32> to vector<1x4x128xf32>
    tpu.vector_store %arg6[%c0_18, %c4_19, %c0_20], %71 {strides = array<i32>} : memref<1x8x128xf32, #tpu.memory_space<vmem>>, vector<1x4x128xf32>,
    return
  }
  func.func @transform_0(%arg0: i32, %arg1: i32) -> (i32, i32, i32) {
    %c0_i32 = arith.constant 0 : i32
    %c0_i32_0 = arith.constant 0 : i32
    return %arg0, %c0_i32, %arg1 : i32, i32, i32
  }
  func.func @transform_1(%arg0: i32, %arg1: i32) -> (i32, i32) {
    %c0_i32 = arith.constant 0 : i32
    %c0_i32_0 = arith.constant 0 : i32
    %c0_i32_1 = arith.constant 0 : i32
    return %c0_i32, %c0_i32_0 : i32, i32
  }
  func.func @transform_2(%arg0: i32, %arg1: i32) -> (i32, i32) {
    %c0_i32 = arith.constant 0 : i32
    %c0_i32_0 = arith.constant 0 : i32
    %c0_i32_1 = arith.constant 0 : i32
    return %c0_i32, %c0_i32_0 : i32, i32
  }
  func.func @transform_3(%arg0: i32, %arg1: i32) -> (i32, i32, i32) {
    %c0_i32 = arith.constant 0 : i32
    %c0_i32_0 = arith.constant 0 : i32
    return %arg0, %c0_i32, %arg1 : i32, i32, i32
  }
  func.func @transform_4(%arg0: i32, %arg1: i32) -> (i32, i32, i32) {
    %c0_i32 = arith.constant 0 : i32
    %c0_i32_0 = arith.constant 0 : i32
    return %arg0, %c0_i32, %arg1 : i32, i32, i32
  }
}

module attributes {stable_mosaic.version = 11 : i64} {
  func.func @_affine_kernel(%arg0: i32, %arg1: i32, %arg2: memref<1x8x128xf32, #tpu.memory_space<vmem>>, %arg3: memref<1x4xf32, #tpu.memory_space<vmem>>, %arg4: memref<1x1xf32, #tpu.memory_space<vmem>>, %arg5: memref<1x2x128xf32, #tpu.memory_space<vmem>>) attributes {dimension_semantics = [#tpu.dimension_semantics<parallel>, #tpu.dimension_semantics<parallel>], iteration_bounds = array<i64: 1, 2>, scalar_prefetch = 0 : i64, scratch_operands = 0 : i64, tpu.core_type = #tpu.core_type<tc>, window_params = [{transform_indices = @transform_0, window_bounds = array<i64: 1, 8, 128>}, {pipeline_mode = #tpu.pipeline_mode<synchronous>, transform_indices = @transform_1, window_bounds = array<i64: 1, 4>}, {pipeline_mode = #tpu.pipeline_mode<synchronous>, transform_indices = @transform_2, window_bounds = array<i64: 1, 1>}, {transform_indices = @transform_3, window_bounds = array<i64: 1, 2, 128>}]} {
    %c0 = arith.constant 0 : index
    %c0_0 = arith.constant 0 : index
    %0 = vector.load %arg3[%c0, %c0_0] : memref<1x4xf32, #tpu.memory_space<vmem>>, vector<1x4xf32>
    %c0_1 = arith.constant 0 : index
    %c0_2 = arith.constant 0 : index
    %1 = vector.load %arg4[%c0_1, %c0_2] : memref<1x1xf32, #tpu.memory_space<vmem>>, vector<1x1xf32>
    %c0_3 = arith.constant 0 : index
    %c0_4 = arith.constant 0 : index
    %c0_5 = arith.constant 0 : index
    %2 = vector.load %arg2[%c0_3, %c0_4, %c0_5] : memref<1x8x128xf32, #tpu.memory_space<vmem>>, vector<1x4x128xf32>
    %3 = vector.shape_cast %2 : vector<1x4x128xf32> to vector<4x128xf32>
    %4 = vector.extract_strided_slice %0 {offsets = [0, 0], sizes = [1, 1], strides = [1, 1]} : vector<1x4xf32> to vector<1x1xf32>
    %5 = vector.extract_strided_slice %3 {offsets = [0, 0], sizes = [1, 128], strides = [1, 1]} : vector<4x128xf32> to vector<1x128xf32>
    %6 = vector.broadcast %4 : vector<1x1xf32> to vector<1x128xf32>
    %7 = arith.mulf %6, %5 : vector<1x128xf32>
    %8 = vector.broadcast %1 : vector<1x1xf32> to vector<1x128xf32>
    %9 = arith.addf %8, %7 : vector<1x128xf32>
    %10 = vector.extract_strided_slice %0 {offsets = [0, 1], sizes = [1, 1], strides = [1, 1]} : vector<1x4xf32> to vector<1x1xf32>
    %11 = vector.extract_strided_slice %3 {offsets = [1, 0], sizes = [1, 128], strides = [1, 1]} : vector<4x128xf32> to vector<1x128xf32>
    %12 = vector.broadcast %10 : vector<1x1xf32> to vector<1x128xf32>
    %13 = arith.mulf %12, %11 : vector<1x128xf32>
    %14 = arith.addf %9, %13 : vector<1x128xf32>
    %15 = vector.extract_strided_slice %0 {offsets = [0, 2], sizes = [1, 1], strides = [1, 1]} : vector<1x4xf32> to vector<1x1xf32>
    %16 = vector.extract_strided_slice %3 {offsets = [2, 0], sizes = [1, 128], strides = [1, 1]} : vector<4x128xf32> to vector<1x128xf32>
    %17 = vector.broadcast %15 : vector<1x1xf32> to vector<1x128xf32>
    %18 = arith.mulf %17, %16 : vector<1x128xf32>
    %19 = arith.addf %14, %18 : vector<1x128xf32>
    %20 = vector.extract_strided_slice %0 {offsets = [0, 3], sizes = [1, 1], strides = [1, 1]} : vector<1x4xf32> to vector<1x1xf32>
    %21 = vector.extract_strided_slice %3 {offsets = [3, 0], sizes = [1, 128], strides = [1, 1]} : vector<4x128xf32> to vector<1x128xf32>
    %22 = vector.broadcast %20 : vector<1x1xf32> to vector<1x128xf32>
    %23 = arith.mulf %22, %21 : vector<1x128xf32>
    %24 = arith.addf %19, %23 : vector<1x128xf32>
    %c0_6 = arith.constant 0 : index
    %c0_7 = arith.constant 0 : index
    %c0_8 = arith.constant 0 : index
    %25 = vector.load %arg5[%c0_6, %c0_7, %c0_8] : memref<1x2x128xf32, #tpu.memory_space<vmem>>, vector<1x1x128xf32>
    %26 = vector.shape_cast %25 : vector<1x1x128xf32> to vector<1x128xf32>
    %27 = vector.shape_cast %24 : vector<1x128xf32> to vector<1x1x128xf32>
    tpu.vector_store %arg5[%c0_6, %c0_7, %c0_8], %27 {strides = array<i32>} : memref<1x2x128xf32, #tpu.memory_space<vmem>>, vector<1x1x128xf32>,
    %c0_9 = arith.constant 0 : index
    %c4 = arith.constant 4 : index
    %c0_10 = arith.constant 0 : index
    %28 = vector.load %arg2[%c0_9, %c4, %c0_10] : memref<1x8x128xf32, #tpu.memory_space<vmem>>, vector<1x4x128xf32>
    %29 = vector.shape_cast %28 : vector<1x4x128xf32> to vector<4x128xf32>
    %30 = vector.extract_strided_slice %0 {offsets = [0, 0], sizes = [1, 1], strides = [1, 1]} : vector<1x4xf32> to vector<1x1xf32>
    %31 = vector.extract_strided_slice %29 {offsets = [0, 0], sizes = [1, 128], strides = [1, 1]} : vector<4x128xf32> to vector<1x128xf32>
    %32 = vector.broadcast %30 : vector<1x1xf32> to vector<1x128xf32>
    %33 = arith.mulf %32, %31 : vector<1x128xf32>
    %34 = vector.broadcast %1 : vector<1x1xf32> to vector<1x128xf32>
    %35 = arith.addf %34, %33 : vector<1x128xf32>
    %36 = vector.extract_strided_slice %0 {offsets = [0, 1], sizes = [1, 1], strides = [1, 1]} : vector<1x4xf32> to vector<1x1xf32>
    %37 = vector.extract_strided_slice %29 {offsets = [1, 0], sizes = [1, 128], strides = [1, 1]} : vector<4x128xf32> to vector<1x128xf32>
    %38 = vector.broadcast %36 : vector<1x1xf32> to vector<1x128xf32>
    %39 = arith.mulf %38, %37 : vector<1x128xf32>
    %40 = arith.addf %35, %39 : vector<1x128xf32>
    %41 = vector.extract_strided_slice %0 {offsets = [0, 2], sizes = [1, 1], strides = [1, 1]} : vector<1x4xf32> to vector<1x1xf32>
    %42 = vector.extract_strided_slice %29 {offsets = [2, 0], sizes = [1, 128], strides = [1, 1]} : vector<4x128xf32> to vector<1x128xf32>
    %43 = vector.broadcast %41 : vector<1x1xf32> to vector<1x128xf32>
    %44 = arith.mulf %43, %42 : vector<1x128xf32>
    %45 = arith.addf %40, %44 : vector<1x128xf32>
    %46 = vector.extract_strided_slice %0 {offsets = [0, 3], sizes = [1, 1], strides = [1, 1]} : vector<1x4xf32> to vector<1x1xf32>
    %47 = vector.extract_strided_slice %29 {offsets = [3, 0], sizes = [1, 128], strides = [1, 1]} : vector<4x128xf32> to vector<1x128xf32>
    %48 = vector.broadcast %46 : vector<1x1xf32> to vector<1x128xf32>
    %49 = arith.mulf %48, %47 : vector<1x128xf32>
    %50 = arith.addf %45, %49 : vector<1x128xf32>
    %c0_11 = arith.constant 0 : index
    %c1 = arith.constant 1 : index
    %c0_12 = arith.constant 0 : index
    %51 = vector.load %arg5[%c0_11, %c1, %c0_12] : memref<1x2x128xf32, #tpu.memory_space<vmem>>, vector<1x1x128xf32>
    %52 = vector.shape_cast %51 : vector<1x1x128xf32> to vector<1x128xf32>
    %53 = vector.shape_cast %50 : vector<1x128xf32> to vector<1x1x128xf32>
    tpu.vector_store %arg5[%c0_11, %c1, %c0_12], %53 {strides = array<i32>} : memref<1x2x128xf32, #tpu.memory_space<vmem>>, vector<1x1x128xf32>,
    return
  }
  func.func @transform_0(%arg0: i32, %arg1: i32) -> (i32, i32, i32) {
    %c0_i32 = arith.constant 0 : i32
    %c0_i32_0 = arith.constant 0 : i32
    return %arg0, %c0_i32, %arg1 : i32, i32, i32
  }
  func.func @transform_1(%arg0: i32, %arg1: i32) -> (i32, i32) {
    %c0_i32 = arith.constant 0 : i32
    %c0_i32_0 = arith.constant 0 : i32
    %c0_i32_1 = arith.constant 0 : i32
    return %c0_i32, %c0_i32_0 : i32, i32
  }
  func.func @transform_2(%arg0: i32, %arg1: i32) -> (i32, i32) {
    %c0_i32 = arith.constant 0 : i32
    %c0_i32_0 = arith.constant 0 : i32
    %c0_i32_1 = arith.constant 0 : i32
    return %c0_i32, %c0_i32_0 : i32, i32
  }
  func.func @transform_3(%arg0: i32, %arg1: i32) -> (i32, i32, i32) {
    %c0_i32 = arith.constant 0 : i32
    %c0_i32_0 = arith.constant 0 : i32
    return %arg0, %c0_i32, %arg1 : i32, i32, i32
  }
}

</mosaic_0001>

<bundles_post_ra>
// kernel: _lambda_.6
= control target key start
LH: loop header
LB: loop body
LE: loop exit
PB: predicated region body
PF: predicated region fallthrough
CT: control target
= control target key end

     0   :  { %s389_s12 = smov 0   ;;  %s391_s13 = smov 0   ;;  %s425_s0 = inlined_call_operand.vmem [shape: f32[1,2,256], index: 0, kind: input, shape index: {}]   ;;  %s426_s1 = inlined_call_operand.vmem [shape: f32[4,1], index: 1, kind: input, shape index: {}]   ;;  %s427_s2 = inlined_call_operand.vmem [shape: f32[4,1], index: 2, kind: input, shape index: {}]   ;;  %s428_s3 = inlined_call_operand.vmem [shape: f32[1,8,256], index: 3, kind: output, shape index: {}]  }
   0x1   :  { %s393_s14 = smov 0  }
   0x2 LB: > { %s22_s15 = sadd.s32 1, %s362_s13  ;;  %p311_p0 = scmp.ge.s32.totalorder %s366_s14, 1  ;;  %s366_s14 = sphi %s393_s14, %s13_s14   ;;  %s362_s13 = sphi %s391_s13, %s430_s13   ;;  %s358_s12 = sphi %s389_s12, %s429_s12  }
   0x3   : > { %p23_p1 = scmp.ge.s32.totalorder %s22_s15, 2  ;;  %p156_p2 = scmp.lt.s32.totalorder %s366_s14, 3 }
   0x5   : > { %s432_s15 = smov (%p23_p1, %s22_s15), 0  ;;  %p157_p3 = pnand %p311_p0, %p156_p2 }
   0x6   : > { %p188_p4 = scmp.lt.s32.totalorder (!%p157_p3), %s358_s12, 1 }
   0x7   : > { %160 = sbr.rel (%p157_p3) target bundleno = 141 (0x8d), region = 32 }
   0xc   : > { %v202_v0 = vld [vmem:[%s426_s1] sm:$0xf]  ;;  %v368_v1 = vmov 0   ;;  %s434_s12 = smov (!%p188_p4, %s358_s12), 1 }
   0xd   : > { %341 = vset.pattern.permute.xlu0 %v368_v1  ;;  %s312_s18 = sshll.u32 %s434_s12, 1  ;;  %v203_v2 = vld [vmem:[%s427_s2] sm:$0xf]  ;;  %s313_s24 = sshll.u32 %s434_s12, 3 }
   0xe   : > { %207 = vperm.xlu0 %341, %v202_v0   ;;  %s193_s21 = scalar_lea.vmem %s425_s0, %s312_s18  ;;  %s201_s27 = scalar_lea.vmem %s428_s3, %s313_s24 }
   0xf   : > { %v342_v4 = vld [vmem:[%s193_s21] ss:$0 sm:$0xff]  ;;  %v343_v5 = vld [vmem:[%s193_s21 + $0x1] ss:$0 sm:$0xff] }
  0x16   : > { %214 = vperm.xlu0 %341, %v203_v2  }
  0x80   : > { %v208_v3 = vpop.permute.xlu0 %207 }
  0x81   : > { %v211_v6 = vmul.f32 %v342_v4, %v208_v3  ;;  %v221_v7 = vmul.f32 %v343_v5, %v208_v3 }
  0x88   : > { %v215_v8 = vpop.permute.xlu0 %214 }
  0x89   : > { %v217_v9 = vadd.f32 %v215_v8, %v211_v6  ;;  %v222_v10 = vadd.f32 %v221_v7, %v215_v8 }
  0x8b   : > { %218 = vst [vmem:[%s201_s27] sm:$0xf] %v217_v9 }
  0x8c   : > { %223 = vst [vmem:[%s201_s27 + $0x4] sm:$0xf] %v222_v10 }
  0x8d PF: > { %s13_s14 = sadd.s32 1, %s366_s14   ;;  %s429_s12 = smov %s362_s13 }
  0x8e   : > { %p10_p5 = scmp.ge.s32.totalorder %s13_s14, 4   ;;  %s430_s13 = smov %s432_s15 }
  0x90   :  { %12 = sbr.rel (!%p10_p5) target bundleno = 2 (0x2), region = 62 }

// kernel: custom-call.1
= control target key start
LH: loop header
LB: loop body
LE: loop exit
PB: predicated region body
PF: predicated region fallthrough
CT: control target
= control target key end

     0   :  { %s113_s0 = inlined_call_operand.vmem [shape: c64[4,4,4,4], index: 0, kind: input, shape index: {}]   ;;  %s114_s1 = inlined_call_operand.vmem [shape: f32[4,4,4,4], index: 1, kind: output, shape index: {}]  }
   0x1   :  { %v40_v0 = vld [vmem:[%s113_s0 + $0x40] sm:$0xff]  ;;  %v41_v1 = vld [vmem:[%s113_s0 + $0x48] sm:$0xff]  ;;  %v43_v2 = vld [vmem:[%s113_s0 + $0x50] sm:$0xff] }
   0x2   :  { %4 = vst [vmem:[%s114_s1] sm:$0xff] %v40_v0  ;;  %v45_v3 = vld [vmem:[%s113_s0 + $0x58] sm:$0xff]  ;;  %v47_v4 = vld [vmem:[%s113_s0 + $0x60] sm:$0xff]  ;;  %v49_v5 = vld [vmem:[%s113_s0 + $0x68] sm:$0xff] }
   0x3   :  { %42 = vst [vmem:[%s114_s1 + $0x8] sm:$0xff] %v41_v1  ;;  %v51_v6 = vld [vmem:[%s113_s0 + $0x70] sm:$0xff]  ;;  %v53_v7 = vld [vmem:[%s113_s0 + $0x78] sm:$0xff] }
   0x4   :  { %44 = vst [vmem:[%s114_s1 + $0x10] sm:$0xff] %v43_v2 }
   0x5   :  { %46 = vst [vmem:[%s114_s1 + $0x18] sm:$0xff] %v45_v3 }
   0x6   :  { %48 = vst [vmem:[%s114_s1 + $0x20] sm:$0xff] %v47_v4 }
   0x7   :  { %50 = vst [vmem:[%s114_s1 + $0x28] sm:$0xff] %v49_v5 }
   0x8   :  { %52 = vst [vmem:[%s114_s1 + $0x30] sm:$0xff] %v51_v6 }
   0x9   :  { %54 = vst [vmem:[%s114_s1 + $0x38] sm:$0xff] %v53_v7 }

// kernel: custom-call
= control target key start
LH: loop header
LB: loop body
LE: loop exit
PB: predicated region body
PF: predicated region fallthrough
CT: control target
= control target key end

     0   :  { %s104_s0 = inlined_call_operand.vmem [shape: c64[4,4,4,4], index: 0, kind: input, shape index: {}]   ;;  %s105_s1 = inlined_call_operand.vmem [shape: f32[4,4,4,4], index: 1, kind: output, shape index: {}]  }
   0x1   :  { %v2_v0 = vld [vmem:[%s104_s0] sm:$0xff]  ;;  %v32_v1 = vld [vmem:[%s104_s0 + $0x8] sm:$0xff]  ;;  %v34_v2 = vld [vmem:[%s104_s0 + $0x10] sm:$0xff] }
   0x2   :  { %3 = vst [vmem:[%s105_s1] sm:$0xff] %v2_v0  ;;  %v36_v3 = vld [vmem:[%s104_s0 + $0x18] sm:$0xff]  ;;  %v38_v4 = vld [vmem:[%s104_s0 + $0x20] sm:$0xff]  ;;  %v40_v5 = vld [vmem:[%s104_s0 + $0x28] sm:$0xff] }
   0x3   :  { %33 = vst [vmem:[%s105_s1 + $0x8] sm:$0xff] %v32_v1  ;;  %v42_v6 = vld [vmem:[%s104_s0 + $0x30] sm:$0xff]  ;;  %v44_v7 = vld [vmem:[%s104_s0 + $0x38] sm:$0xff] }
   0x4   :  { %35 = vst [vmem:[%s105_s1 + $0x10] sm:$0xff] %v34_v2 }
   0x5   :  { %37 = vst [vmem:[%s105_s1 + $0x18] sm:$0xff] %v36_v3 }
   0x6   :  { %39 = vst [vmem:[%s105_s1 + $0x20] sm:$0xff] %v38_v4 }
   0x7   :  { %41 = vst [vmem:[%s105_s1 + $0x28] sm:$0xff] %v40_v5 }
   0x8   :  { %43 = vst [vmem:[%s105_s1 + $0x30] sm:$0xff] %v42_v6 }
   0x9   :  { %45 = vst [vmem:[%s105_s1 + $0x38] sm:$0xff] %v44_v7 }

// kernel: reverse.8
= control target key start
LH: loop header
LB: loop body
LE: loop exit
PB: predicated region body
PF: predicated region fallthrough
CT: control target
= control target key end

     0   :  { %v72_v3 = vlaneseq  ;;  %v65_v6 = vld [vmem:[#allocation0 + $0x7] ss:$-1 sm:$0xff]  ;;  %v79_v8 = vld [vmem:[#allocation0 + $0x17] ss:$-1 sm:$0xff]  ;;  %s331_s0 = inlined_call_operand.vmem [shape: f32[2,4,16,7], index: 0, kind: input, shape index: {}]   ;;  %s332_s1 = inlined_call_operand.vmem [shape: f32[2,4,16,7], index: 1, kind: output, shape index: {}]  }
   0x1   :  { %v45_v0 = vld [vmem:[%s331_s0] sm:$0xff]  ;;  %v47_v1 = vld [vmem:[%s331_s0 + $0x8] sm:$0xff]  ;;  %v49_v2 = vld [vmem:[%s331_s0 + $0x10] sm:$0xff]  ;;  %v66_v12 = vrot.slane %v65_v6, 1  ;;  %v80_v13 = vrot.slane %v79_v8, 1 }
   0x2   :  { %46 = vst [vmem:[#allocation0 + $0x8] sm:$0xff] %v45_v0  ;;  %v51_v4 = vld [vmem:[%s331_s0 + $0x18] sm:$0xff]  ;;  %v53_v5 = vld [vmem:[%s331_s0 + $0x20] sm:$0xff]  ;;  %v55_v7 = vld [vmem:[%s331_s0 + $0x28] sm:$0xff]  ;;  %v73_v10 = vshrl.u32 %v72_v3, 7 }
   0x3   :  { %48 = vst [vmem:[#allocation0 + $0x18] sm:$0xff] %v47_v1  ;;  %v57_v9 = vld [vmem:[%s331_s0 + $0x30] sm:$0xff]  ;;  %v59_v11 = vld [vmem:[%s331_s0 + $0x38] sm:$0xff]  ;;  %v93_v14 = vld [vmem:[#allocation0 + $0x27] ss:$-1 sm:$0xff] }
   0x4   :  { %50 = vst [vmem:[#allocation0 + $0x28] sm:$0xff] %v49_v2  ;;  %vm74_vm0 = vcmp.lt.s32.totalorder %v73_v10, 7  ;;  %v107_v16 = vld [vmem:[#allocation0 + $0x37] ss:$-1 sm:$0xff]  ;;  %v94_v19 = vrot.slane %v93_v14, 1 }
   0x5   :  { %52 = vst [vmem:[#allocation0 + $0x38] sm:$0xff] %v51_v4  ;;  %v121_v22 = vld [vmem:[#allocation0 + $0x47] ss:$-1 sm:$0xff]  ;;  %v108_v24 = vrot.slane %v107_v16, 1  ;;  %v135_v28 = vld [vmem:[#allocation0 + $0x57] ss:$-1 sm:$0xff] }
   0x6   :  { %54 = vst [vmem:[#allocation0 + $0x48] sm:$0xff] %v53_v5  ;;  %v122_v29 = vrot.slane %v121_v22, 1  ;;  %v149_v32 = vld [vmem:[#allocation0 + $0x67] ss:$-1 sm:$0xff]  ;;  %v136_v33 = vrot.slane %v135_v28, 1 }
   0x7   :  { %56 = vst [vmem:[#allocation0 + $0x58] sm:$0xff] %v55_v7  ;;  %v163_v36 = vld [vmem:[#allocation0 + $0x77] ss:$-1 sm:$0xff]  ;;  %v150_v37 = vrot.slane %v149_v32, 1 }
   0x8   :  { %58 = vst [vmem:[#allocation0 + $0x68] sm:$0xff] %v57_v9  ;;  %v164_v40 = vrot.slane %v163_v36, 1 }
   0x9   :  { %60 = vst [vmem:[#allocation0 + $0x78] sm:$0xff] %v59_v11  ;;  %v70_v15 = vld [vmem:[#allocation0 + $0xf] ss:$-1 sm:$0xff] }
   0xa   :  { %67 = vst [vmem:[#allocation1] sm:$0xff] %v66_v12  ;;  %v71_v17 = vrot.slane %v70_v15, 1  ;;  %v84_v18 = vld [vmem:[#allocation0 + $0x1f] ss:$-1 sm:$0xff] }
   0xb   :  { %81 = vst [vmem:[#allocation1 + $0x8] sm:$0xff] %v80_v13  ;;  %v85_v20 = vrot.slane %v84_v18, 1  ;;  %v98_v21 = vld [vmem:[#allocation0 + $0x2f] ss:$-1 sm:$0xff] }
   0xc   :  { %75 = vst.msk [vmem:[#allocation1] sm:$0xff] %vm74_vm0, %v71_v17  ;;  %v99_v23 = vrot.slane %v98_v21, 1  ;;  %v112_v25 = vld [vmem:[#allocation0 + $0x3f] ss:$-1 sm:$0xff] }
   0xd   :  { %89 = vst.msk [vmem:[#allocation1 + $0x8] sm:$0xff] %vm74_vm0, %v85_v20  ;;  %v113_v26 = vrot.slane %v112_v25, 1  ;;  %v126_v27 = vld [vmem:[#allocation0 + $0x4f] ss:$-1 sm:$0xff] }
   0xe   :  { %95 = vst [vmem:[#allocation1 + $0x10] sm:$0xff] %v94_v19  ;;  %v140_v30 = vld [vmem:[#allocation0 + $0x5f] ss:$-1 sm:$0xff]  ;;  %v127_v31 = vrot.slane %v126_v27, 1 }
   0xf   :  { %103 = vst.msk [vmem:[#allocation1 + $0x10] sm:$0xff] %vm74_vm0, %v99_v23  ;;  %v154_v34 = vld [vmem:[#allocation0 + $0x6f] ss:$-1 sm:$0xff]  ;;  %v141_v35 = vrot.slane %v140_v30, 1 }
  0x10   :  { %109 = vst [vmem:[#allocation1 + $0x18] sm:$0xff] %v108_v24  ;;  %v168_v38 = vld [vmem:[#allocation0 + $0x7f] ss:$-1 sm:$0xff]  ;;  %v155_v39 = vrot.slane %v154_v34, 1 }
  0x11   :  { %117 = vst.msk [vmem:[#allocation1 + $0x18] sm:$0xff] %vm74_vm0, %v113_v26  ;;  %v169_v41 = vrot.slane %v168_v38, 1 }
  0x12   :  { %123 = vst [vmem:[#allocation1 + $0x20] sm:$0xff] %v122_v29 }
  0x13   :  { %131 = vst.msk [vmem:[#allocation1 + $0x20] sm:$0xff] %vm74_vm0, %v127_v31  ;;  %v216_v42 = vld [vmem:[#allocation1] sm:$0xff] }
  0x14   :  { %137 = vst [vmem:[#allocation1 + $0x28] sm:$0xff] %v136_v33  ;;  %v218_v43 = vld [vmem:[#allocation1 + $0x8] sm:$0xff] }
  0x15   :  { %145 = vst.msk [vmem:[#allocation1 + $0x28] sm:$0xff] %vm74_vm0, %v141_v35 }
  0x16   :  { %151 = vst [vmem:[#allocation1 + $0x30] sm:$0xff] %v150_v37  ;;  %v220_v44 = vld [vmem:[#allocation1 + $0x10] sm:$0xff] }
  0x17   :  { %159 = vst.msk [vmem:[#allocation1 + $0x30] sm:$0xff] %vm74_vm0, %v155_v39 }
  0x18   :  { %165 = vst [vmem:[#allocation1 + $0x38] sm:$0xff] %v164_v40  ;;  %v222_v45 = vld [vmem:[#allocation1 + $0x18] sm:$0xff] }
  0x19   :  { %173 = vst.msk [vmem:[#allocation1 + $0x38] sm:$0xff] %vm74_vm0, %v169_v41 }
  0x1a   :  { %217 = vst [vmem:[%s332_s1] sm:$0xff] %v216_v42  ;;  %v224_v46 = vld [vmem:[#allocation1 + $0x20] sm:$0xff] }
  0x1b   :  { %219 = vst [vmem:[%s332_s1 + $0x8] sm:$0xff] %v218_v43 }
  0x1c   :  { %221 = vst [vmem:[%s332_s1 + $0x10] sm:$0xff] %v220_v44  ;;  %v226_v47 = vld [vmem:[#allocation1 + $0x28] sm:$0xff] }
  0x1d   :  { %223 = vst [vmem:[%s332_s1 + $0x18] sm:$0xff] %v222_v45 }
  0x1e   :  { %225 = vst [vmem:[%s332_s1 + $0x20] sm:$0xff] %v224_v46  ;;  %v228_v48 = vld [vmem:[#allocation1 + $0x30] sm:$0xff] }
  0x1f   :  { %227 = vst [vmem:[%s332_s1 + $0x28] sm:$0xff] %v226_v47 }
  0x20   :  { %229 = vst [vmem:[%s332_s1 + $0x30] sm:$0xff] %v228_v48  ;;  %v230_v49 = vld [vmem:[#allocation1 + $0x38] sm:$0xff] }
  0x21   :  { %231 = vst [vmem:[%s332_s1 + $0x38] sm:$0xff] %v230_v49 }

// kernel: _lambda_.7
= control target key start
LH: loop header
LB: loop body
LE: loop exit
PB: predicated region body
PF: predicated region fallthrough
CT: control target
= control target key end

     0   :  { %s515_s15 = smov 0   ;;  %s517_s16 = smov 0   ;;  %s562_s0 = inlined_call_operand.vmem [shape: f32[1,8,256], index: 0, kind: input, shape index: {}]   ;;  %s563_s1 = inlined_call_operand.vmem [shape: f32[4,4], index: 1, kind: input, shape index: {}]   ;;  %s564_s2 = inlined_call_operand.vmem [shape: f32[4,1], index: 2, kind: input, shape index: {}]   ;;  %s565_s3 = inlined_call_operand.vmem [shape: f32[1,8,256], index: 3, kind: input, shape index: {}]   ;;  %s566_s4 = inlined_call_operand.vmem [shape: f32[1,8,256], index: 4, kind: output, shape index: {}]  }
   0x1   :  { %s519_s17 = smov 0  }
   0x2 LB: > { %s23_s18 = sadd.s32 1, %s480_s16  ;;  %p423_p0 = scmp.ge.s32.totalorder %s484_s17, 1  ;;  %s484_s17 = sphi %s519_s17, %s14_s17   ;;  %s480_s16 = sphi %s517_s16, %s568_s16   ;;  %s476_s15 = sphi %s515_s15, %s567_s15  }
   0x3   : > { %p24_p1 = scmp.ge.s32.totalorder %s23_s18, 2  ;;  %p196_p2 = scmp.lt.s32.totalorder %s484_s17, 3 }
   0x5   : > { %s570_s18 = smov (%p24_p1, %s23_s18), 0  ;;  %p197_p3 = pnand %p423_p0, %p196_p2 }
   0x6   : > { %p238_p4 = scmp.lt.s32.totalorder (!%p197_p3), %s476_s15, 1 }
   0x7   : > { %200 = sbr.rel (%p197_p3) target bundleno = 151 (0x97), region = 36 }
   0xc   : > { %v260_v0 = vld [vmem:[%s563_s1] sm:$0xf]  ;;  %v486_v1 = vmov 0   ;;  %v487_v2 = vmov 1   ;;  %v488_v3 = vmov 3   ;;  %v489_v5 = vmov 2  }
   0xd   : > { %457 = vset.pattern.permute.xlu0 %v486_v1  ;;  %458 = vset.pattern.permute.xlu1 %v487_v2  ;;  %v261_v4 = vld [vmem:[%s564_s2] sm:$0xf]  ;;  %s572_s15 = smov (!%p238_p4, %s476_s15), 1 }
   0xe   : > { %265 = vperm.xlu0 %457, %v260_v0   ;;  %277 = vperm.xlu1 %458, %v260_v0   ;;  %s539_s23 = sshll.u32 %s572_s15, 3 }
   0xf   : > { %460 = vset.pattern.permute.xlu2 %v488_v3  ;;  %s243_s26 = scalar_lea.vmem %s562_s0, %s539_s23  ;;  %s251_s29 = scalar_lea.vmem %s565_s3, %s539_s23 }
  0x10   : > { %291 = vperm.xlu2 %460, %v260_v0   ;;  %v262_v7 = vld [vmem:[%s243_s26] sm:$0xf]  ;;  %v301_v8 = vld [vmem:[%s243_s26 + $0x4] sm:$0xf]  ;;  %s259_s6 = scalar_lea.vmem %s566_s4, %s539_s23 }
  0x11   : > { %v268_v10 = vperm.slane %v262_v7, 0  ;;  %v302_v11 = vperm.slane %v301_v8, 0  ;;  %v280_v12 = vperm.slane %v262_v7, 1  ;;  %v305_v13 = vperm.slane %v301_v8, 1  ;;  %v297_v35 = vld [vmem:[%s251_s29] sm:$0xf] }
  0x12   : > { %v287_v14 = vperm.slane %v262_v7, 2  ;;  %v308_v15 = vperm.slane %v301_v8, 2  ;;  %v294_v18 = vperm.slane %v262_v7, 3  ;;  %v311_v19 = vperm.slane %v301_v8, 3  ;;  %v314_v36 = vld [vmem:[%s251_s29 + $0x4] sm:$0xf] }
  0x16   : > { %272 = vperm.xlu0 %457, %v261_v4   ;;  %459 = vset.pattern.permute.xlu1 %v489_v5 }
  0x17   : > { %284 = vperm.xlu1 %459, %v260_v0  }
  0x1e   : > { %461 = vset.pattern.permute.xlu0 %v488_v3 }
  0x6a   : > { %v292_v21 = vpop.permute.xlu2 %291 }
  0x6b   : > { %v295_v31 = vmul.f32 %v294_v18, %v292_v21  ;;  %v312_v32 = vmul.f32 %v311_v19, %v292_v21 }
  0x80   : > { %v266_v6 = vpop.permute.xlu0 %265  ;;  %v278_v9 = vpop.permute.xlu1 %277 }
  0x81   : > { %v269_v16 = vmul.f32 %v268_v10, %v266_v6  ;;  %v303_v17 = vmul.f32 %v302_v11, %v266_v6  ;;  %v281_v22 = vmul.f32 %v280_v12, %v278_v9  ;;  %v306_v23 = vmul.f32 %v305_v13, %v278_v9 }
  0x88   : > { %v273_v20 = vpop.permute.xlu0 %272 }
  0x89   : > { %v275_v24 = vadd.f32 %v273_v20, %v269_v16  ;;  %v304_v25 = vadd.f32 %v303_v17, %v273_v20  ;;  %v285_v26 = vpop.permute.xlu1 %284 }
  0x8a   : > { %v288_v27 = vmul.f32 %v287_v14, %v285_v26  ;;  %v309_v28 = vmul.f32 %v308_v15, %v285_v26 }
  0x8b   : > { %v282_v29 = vadd.f32 %v281_v22, %v275_v24  ;;  %v307_v30 = vadd.f32 %v306_v23, %v304_v25 }
  0x8d   : > { %v289_v33 = vadd.f32 %v288_v27, %v282_v29  ;;  %v310_v34 = vadd.f32 %v309_v28, %v307_v30 }
  0x8f   : > { %v296_v37 = vadd.f32 %v295_v31, %v289_v33  ;;  %v313_v38 = vadd.f32 %v312_v32, %v310_v34 }
  0x91   : > { %v298_v39 = vadd.f32 %v297_v35, %v296_v37  ;;  %v315_v40 = vadd.f32 %v314_v36, %v313_v38 }
  0x93   : > { %v299_v41 = vmax.f32 %v298_v39, 0.0  ;;  %v316_v42 = vmax.f32 %v315_v40, 0.0 }
  0x95   : > { %300 = vst [vmem:[%s259_s6] sm:$0xf] %v299_v41 }
  0x96   : > { %317 = vst [vmem:[%s259_s6 + $0x4] sm:$0xf] %v316_v42 }
  0x97 PF: > { %s14_s17 = sadd.s32 1, %s484_s17   ;;  %s567_s15 = smov %s480_s16 }
  0x98   : > { %p11_p5 = scmp.ge.s32.totalorder %s14_s17, 4   ;;  %s568_s16 = smov %s570_s18 }
  0x9a   :  { %13 = sbr.rel (!%p11_p5) target bundleno = 2 (0x2), region = 69 }

// kernel: _lambda_.11
= control target key start
LH: loop header
LB: loop body
LE: loop exit
PB: predicated region body
PF: predicated region fallthrough
CT: control target
= control target key end

     0   :  { %s448_s14 = smov 0   ;;  %s450_s15 = smov 0   ;;  %s488_s0 = inlined_call_operand.vmem [shape: f32[1,8,256], index: 0, kind: input, shape index: {}]   ;;  %s489_s1 = inlined_call_operand.vmem [shape: f32[1,4], index: 1, kind: input, shape index: {}]   ;;  %s490_s2 = inlined_call_operand.<no memory space> [shape: f32[1,1], index: 2, kind: input, shape index: {}]   ;;  %s491_s3 = inlined_call_operand.vmem [shape: f32[1,2,256], index: 3, kind: output, shape index: {}]  }
   0x1   :  { %v8_v0 = vstv %s490_s2  ;;  %s452_s16 = smov 0  }
   0x2   :  { %9 = vst [vmem:[#allocation2] sm:$0x1] %v8_v0 }
   0x3 LB: > { %s24_s2 = sadd.s32 1, %s415_s15  ;;  %p358_p0 = scmp.ge.s32.totalorder %s419_s16, 1  ;;  %s419_s16 = sphi %s452_s16, %s15_s16   ;;  %s415_s15 = sphi %s450_s15, %s493_s15   ;;  %s411_s14 = sphi %s448_s14, %s492_s14  }
   0x4   : > { %p25_p1 = scmp.ge.s32.totalorder %s24_s2, 2  ;;  %p158_p2 = scmp.lt.s32.totalorder %s419_s16, 3 }
   0x6   : > { %s495_s2 = smov (%p25_p1, %s24_s2), 0  ;;  %p159_p3 = pnand %p358_p0, %p158_p2 }
   0x7   : > { %p190_p4 = scmp.lt.s32.totalorder (!%p159_p3), %s411_s14, 1 }
   0x8   : > { %162 = sbr.rel (%p159_p3) target bundleno = 153 (0x99), region = 32 }
   0xd   : > { %v204_v1 = vld [vmem:[%s489_s1] sm:$0x1]  ;;  %v421_v3 = vmov 0   ;;  %v422_v4 = vmov 3   ;;  %v423_v5 = vmov 1   ;;  %v424_v6 = vmov 2  }
   0xe   : > { %v205_v2 = vld [vmem:[#allocation2] sm:$0x1]  ;;  %391 = vset.pattern.permute.xlu0 %v421_v3  ;;  %393 = vset.pattern.permute.xlu1 %v421_v3  ;;  %s497_s14 = smov (!%p190_p4, %s411_s14), 1 }
   0xf   : > { %209 = vperm.xlu0 %391, %v204_v1   ;;  %216 = vperm.xlu1 %393, %v205_v2   ;;  %s359_s19 = sshll.u32 %s497_s14, 3  ;;  %s360_s23 = sshll.u32 %s497_s14, 1 }
  0x10   : > { %395 = vset.pattern.permute.xlu2 %v422_v4  ;;  %s195_s22 = scalar_lea.vmem %s488_s0, %s359_s19  ;;  %s203_s26 = scalar_lea.vmem %s491_s3, %s360_s23 }
  0x11   : > { %242 = vperm.xlu2 %395, %v204_v1   ;;  %v206_v11 = vld [vmem:[%s195_s22] sm:$0xf]  ;;  %v252_v12 = vld [vmem:[%s195_s22 + $0x4] sm:$0xf] }
  0x17   : > { %392 = vset.pattern.permute.xlu0 %v423_v5  ;;  %394 = vset.pattern.permute.xlu1 %v424_v6 }
  0x18   : > { %222 = vperm.xlu0 %392, %v204_v1   ;;  %232 = vperm.xlu1 %394, %v204_v1  }
  0x20   : > { %396 = vset.pattern.permute.xlu0 %v422_v4 }
  0x6b   : > { %v243_v9 = vpop.permute.xlu2 %242 }
  0x6c   : > { %v245_v13 = vperm.slane %v243_v9, 0 }
  0x6e   : > { %v246_v21 = vmul.f32 %v245_v13, %v206_v11  ;;  %v265_v22 = vmul.f32 %v252_v12, %v245_v13 }
  0x70   : > { %v248_v35 = vrot.slane %v246_v21, 3  ;;  %v267_v36 = vrot.slane %v265_v22, 3 }
  0x81   : > { %v210_v7 = vpop.permute.xlu0 %209  ;;  %v217_v8 = vpop.permute.xlu1 %216 }
  0x82   : > { %v212_v10 = vperm.slane %v210_v7, 0  ;;  %v219_v16 = vperm.slane %v217_v8, 0 }
  0x84   : > { %v213_v14 = vmul.f32 %v212_v10, %v206_v11  ;;  %v253_v15 = vmul.f32 %v252_v12, %v212_v10 }
  0x86   : > { %v220_v27 = vadd.f32 %v219_v16, %v213_v14  ;;  %v254_v28 = vadd.f32 %v253_v15, %v219_v16 }
  0x8a   : > { %v223_v17 = vpop.permute.xlu0 %222  ;;  %v233_v18 = vpop.permute.xlu1 %232 }
  0x8b   : > { %v225_v19 = vperm.slane %v223_v17, 0  ;;  %v235_v20 = vperm.slane %v233_v18, 0 }
  0x8d   : > { %v226_v23 = vmul.f32 %v225_v19, %v206_v11  ;;  %v255_v24 = vmul.f32 %v252_v12, %v225_v19  ;;  %v236_v25 = vmul.f32 %v235_v20, %v206_v11  ;;  %v260_v26 = vmul.f32 %v252_v12, %v235_v20 }
  0x8f   : > { %v228_v29 = vrot.slane %v226_v23, 1  ;;  %v257_v30 = vrot.slane %v255_v24, 1  ;;  %v238_v31 = vrot.slane %v236_v25, 2  ;;  %v262_v32 = vrot.slane %v260_v26, 2 }
  0x91   : > { %v230_v33 = vadd.f32 %v228_v29, %v220_v27  ;;  %v259_v34 = vadd.f32 %v257_v30, %v254_v28 }
  0x93   : > { %v240_v37 = vadd.f32 %v238_v31, %v230_v33  ;;  %v264_v38 = vadd.f32 %v262_v32, %v259_v34 }
  0x95   : > { %v250_v39 = vadd.f32 %v248_v35, %v240_v37  ;;  %v269_v40 = vadd.f32 %v267_v36, %v264_v38 }
  0x97   : > { %251 = vst [vmem:[%s203_s26] sm:$0x1] %v250_v39 }
  0x98   : > { %270 = vst [vmem:[%s203_s26 + $0x1] sm:$0x1] %v269_v40 }
  0x99 PF: > { %s15_s16 = sadd.s32 1, %s419_s16   ;;  %s492_s14 = smov %s415_s15 }
  0x9a   : > { %p12_p5 = scmp.ge.s32.totalorder %s15_s16, 4   ;;  %s493_s15 = smov %s495_s2 }
  0x9c   :  { %14 = sbr.rel (!%p12_p5) target bundleno = 3 (0x3), region = 62 }

</bundles_post_ra>
